<compile_context>
chip_gen: v5e
topology: v5e:2x2
jax: 0.10.0
libtpu: 0.0.40
codegen_flags: <defaults>
</compile_context>

<pallas_src>
from functools import partial

import jax
import jax.numpy as jnp
from jax.experimental import pallas as pl
from jax.experimental.pallas import tpu as pltpu
import numpy as np


# ---------------- Pallas kernels ----------------

def proj_kernel(x_ref, w_ref, a_ref, fp_ref, sc_ref):
    """Row-tiled projection + fused attention-logit matmul.

    x_ref : (Tm, Din)   input features (bf16)
    w_ref : (Din, H*F)  fc weight (bf16)
    a_ref : (H*F, 2H)   block-structured [attn_l | attn_r] matrix (f32)
    fp_ref: (Tm, H*F)   projected features, stored bf16 for the aggregation
    sc_ref: (Tm, 2H)    [el | er] logits, kept f32 (feeds exp())
    """
    # bf16 x bf16 -> f32 accumulate: 2x MXU rate, half the feat/W DMA bytes.
    fp = jnp.dot(x_ref[...], w_ref[...], preferred_element_type=jnp.float32)
    # el/er as one tiny MXU matmul (replaces per-head XLU reductions).
    sc_ref[...] = jnp.dot(fp, a_ref[...], preferred_element_type=jnp.float32)
    fp_ref[...] = fp.astype(jnp.bfloat16)


def gat_attn_kernel(adjt_ref, elt_ref, er_ref, fp_ref, b_ref, o_ref, *,
                    num_heads, out_feats):
    """Fused-head, dst-tiled graph attention.

    adjt_ref: (Tdst, Nsrc) int8 adjacency in [dst, src] layout
    elt_ref : (H, Nsrc)    src logits, lane-dense over src
    er_ref  : (Tdst, H)    dst logits for this tile
    fp_ref  : (Nsrc, H*F)  projected src features (bf16)
    b_ref   : (1, H*F)     bias
    o_ref   : (Tdst, H*F)  lane-dense output slab
    """
    # Only a narrow boolean mask stays live across the head loop (not an f32
    # additive bias): less vreg/VMEM pressure, and any adj value > 0 is an edge.
    edge = adjt_ref[...] > 0                          # (Tdst, Nsrc) bool

    for h in range(num_heads):                        # static unroll over heads
        lo = h * out_feats
        hi = lo + out_feats
        # e[j, i] = er[j] + el[i]   -> (Tdst, Nsrc), MXU-native orientation
        e = er_ref[:, h:h + 1] + elt_ref[h:h + 1, :]
        e = jnp.where(e >= 0, e, 0.2 * e)             # leaky_relu(0.2)
        e = jnp.where(edge, e, -1e30)                 # mask non-edges
        m = jnp.max(e, axis=-1, keepdims=True)        # (Tdst, 1)
        p = jnp.exp(e - m)                            # f32; masked entries -> 0
        s = jnp.sum(p, axis=-1, keepdims=True)        # (Tdst, 1), > 0 (self-loops)
        # Deferred normalization: matmul the UNNORMALIZED p (bf16) against the
        # lazily-sliced per-head features, then scale the small (Tdst, F) tile.
        xh = fp_ref[:, lo:hi]                         # (Nsrc, F) bf16, lazy load
        acc = jnp.dot(p.astype(jnp.bfloat16), xh,
                      preferred_element_type=jnp.float32)
        inv = pl.reciprocal(s, approx=True)           # EUP slot, (Tdst, 1)
        # Per-head slice-store into the lane-dense output tile (no concat),
        # bias added in-kernel.
        o_ref[:, lo:hi] = acc * inv + b_ref[:, lo:hi]


# ---------------- wrapper ----------------

def gat_conv_forward(feat, adj_ds, W, attn_l, attn_r, bias, *,
                     tm=128, tdst=128):
    """feat: [N, Din] f32, adj_ds: [N, N] int8 in [dst, src] layout
    (adj_ds[j, i] != 0 iff edge i -> j; self-loops required),
    W: [Din, H*F], attn_l/attn_r: [H, F], bias: [H*F]. Returns [N, H*F] f32."""
    N, Din = feat.shape
    H, F = attn_l.shape
    HF = H * F

    tm = min(tm, N)
    tdst = min(tdst, N)
    assert N % tm == 0 and N % tdst == 0, "N must be divisible by the tile sizes"
    # TODO(synk): for very large N (esp. on v7x's 64 MiB VMEM), also tile the
    # src axis with an online-softmax accumulator; here the full src row fits.

    # Block-structured attention matrix: scores = feat_proj @ A -> [el | er].
    eyeH = jnp.eye(H, dtype=jnp.float32)
    A = jnp.concatenate(
        [(attn_l[:, :, None] * eyeH[:, None, :]).reshape(HF, H),
         (attn_r[:, :, None] * eyeH[:, None, :]).reshape(HF, H)], axis=1)  # (HF, 2H)

    vmem_limit = 32 * 1024 * 1024   # fits v5e/v6e scoped budgets and v7x's ceiling

    feat_bf = feat.astype(jnp.bfloat16)
    W_bf = W.astype(jnp.bfloat16)

    # --- kernel 1: row-tiled projection + el/er (bf16 matmul, f32 logits) ---
    fp_bf16, scores = pl.pallas_call(
        proj_kernel,
        out_shape=(jax.ShapeDtypeStruct((N, HF), jnp.bfloat16),
                   jax.ShapeDtypeStruct((N, 2 * H), jnp.float32)),
        grid=(N // tm,),
        in_specs=[pl.BlockSpec((tm, Din), lambda i: (i, 0)),
                  pl.BlockSpec((Din, HF), lambda i: (0, 0)),
                  pl.BlockSpec((HF, 2 * H), lambda i: (0, 0))],
        out_specs=(pl.BlockSpec((tm, HF), lambda i: (i, 0)),
                   pl.BlockSpec((tm, 2 * H), lambda i: (i, 0))),
        compiler_params=pltpu.CompilerParams(
            dimension_semantics=("parallel",),
            vmem_limit_bytes=vmem_limit),
    )(feat_bf, W_bf, A)

    # Tiny (N, H) slices; transposing el is N*H elements (negligible).
    el_t = scores[:, :H].T          # (H, N)  lane-dense over src
    er = scores[:, H:]              # (N, H)
    bias2d = bias.reshape(1, HF).astype(jnp.float32)

    # --- kernel 2: fused-head, dst-tiled attention + aggregation + bias ---
    out = pl.pallas_call(
        partial(gat_attn_kernel, num_heads=H, out_feats=F),
        out_shape=jax.ShapeDtypeStruct((N, HF), jnp.float32),
        grid=(N // tdst,),
        in_specs=[pl.BlockSpec((tdst, N), lambda j: (j, 0)),   # adj int8 [dst,src]
                  pl.BlockSpec((H, N), lambda j: (0, 0)),      # el (all src)
                  pl.BlockSpec((tdst, H), lambda j: (j, 0)),   # er (dst tile)
                  pl.BlockSpec((N, HF), lambda j: (0, 0)),     # feat_proj bf16
                  pl.BlockSpec((1, HF), lambda j: (0, 0))],    # bias
        out_specs=pl.BlockSpec((tdst, HF), lambda j: (j, 0)),  # lane-dense slab
        compiler_params=pltpu.CompilerParams(
            dimension_semantics=("parallel",),
            vmem_limit_bytes=vmem_limit),
    )(adj_ds, el_t, er, fp_bf16, bias2d)

    return out


# ---------------- pure-JAX reference (f32) ----------------

def gat_conv_ref(feat, adj_ds, W, attn_l, attn_r, bias):
    N = feat.shape[0]
    H, F = attn_l.shape
    fp = (feat @ W).reshape(N, H, F)
    el = (fp * attn_l[None]).sum(-1)                 # (N, H) src scores
    er = (fp * attn_r[None]).sum(-1)                 # (N, H) dst scores
    e = er[:, None, :] + el[None, :, :]              # (dst, src, H)
    e = jnp.where(e >= 0, e, 0.2 * e)
    mask = adj_ds[:, :, None] > 0                    # (dst, src, 1)
    e = jnp.where(mask, e, -1e30)
    m = e.max(axis=1, keepdims=True)
    p = jnp.where(mask, jnp.exp(e - m), 0.0)
    a = p / p.sum(axis=1, keepdims=True)
    out = jnp.einsum('dsh,shf->dhf', a, fp)          # (dst, H, F)
    out = out + bias.reshape(1, H, F)
    return out.reshape(N, H * F)


# ---------------- main ----------------

if __name__ == "__main__":
    N = 256          # number of nodes (2 grid steps at 128-row tiles)
    D_IN = 64        # in_feats
    F_OUT = 32       # out_feats
    H = 4            # num_heads   (H * F_OUT = 128 -> lane-dense output)

    key = jax.random.PRNGKey(0)
    k_feat, k_adj, k_w, k_al, k_ar = jax.random.split(key, 5)

    feat = jax.random.normal(k_feat, (N, D_IN), dtype=jnp.float32)

    # random sparse-ish graph + self loops, [dst, src] layout, int8
    adj_ds = (jax.random.uniform(k_adj, (N, N)) < 0.1)
    adj_ds = jnp.logical_or(adj_ds, jnp.eye(N, dtype=bool)).astype(jnp.int8)

    # deterministic synthetic params (xavier-normal-ish, gain=sqrt(2)); bias=0
    gain = float(np.sqrt(2.0))
    W = gain * jnp.sqrt(2.0 / (D_IN + H * F_OUT)) * \
        jax.random.normal(k_w, (D_IN, H * F_OUT), dtype=jnp.float32)
    attn_l = gain * jnp.sqrt(2.0 / (1 + F_OUT)) * \
        jax.random.normal(k_al, (H, F_OUT), dtype=jnp.float32)
    attn_r = gain * jnp.sqrt(2.0 / (1 + F_OUT)) * \
        jax.random.normal(k_ar, (H, F_OUT), dtype=jnp.float32)
    bias = jnp.zeros((H * F_OUT,), dtype=jnp.float32)

    out = gat_conv_forward(feat, adj_ds, W, attn_l, attn_r, bias)
    out = jax.block_until_ready(out)

    ref = gat_conv_ref(feat, adj_ds, W, attn_l, attn_r, bias)
    # Tolerance reflects the bf16 projection matmul, bf16 p @ x_h aggregation
    # (f32 accumulate) and the EUP approximate reciprocal; the el/er/exp path
    # itself stays in f32.
    np.testing.assert_allclose(np.asarray(out), np.asarray(ref),
                               rtol=3e-2, atol=3e-2)

    # TODO(synk): feat_drop / attn_drop (eval-mode identity here), residual fc,
    # norm and activation hooks are not used in this configuration.
    print("KERNEL_OK")
</pallas_src>

<mosaic_0001>
module attributes {stable_mosaic.version = 11 : i64} {
  func.func @proj_kernel(%arg0: i32, %arg1: memref<128x64xbf16, #tpu.memory_space<vmem>>, %arg2: memref<64x128xbf16, #tpu.memory_space<vmem>>, %arg3: memref<128x8xf32, #tpu.memory_space<vmem>>, %arg4: memref<128x128xbf16, #tpu.memory_space<vmem>>, %arg5: memref<128x8xf32, #tpu.memory_space<vmem>>) attributes {dimension_semantics = [#tpu.dimension_semantics<parallel>], iteration_bounds = array<i64: 2>, scalar_prefetch = 0 : i64, scratch_operands = 0 : i64, tpu.core_type = #tpu.core_type<tc>, window_params = [{transform_indices = @transform_0, window_bounds = array<i64: 128, 64>}, {pipeline_mode = #tpu.pipeline_mode<synchronous>, transform_indices = @transform_1, window_bounds = array<i64: 64, 128>}, {pipeline_mode = #tpu.pipeline_mode<synchronous>, transform_indices = @transform_2, window_bounds = array<i64: 128, 8>}, {transform_indices = @transform_3, window_bounds = array<i64: 128, 128>}, {transform_indices = @transform_4, window_bounds = array<i64: 128, 8>}]} {
    %c0 = arith.constant 0 : index
    %c0_0 = arith.constant 0 : index
    %0 = vector.load %arg1[%c0, %c0_0] : memref<128x64xbf16, #tpu.memory_space<vmem>>, vector<128x64xbf16>
    %c0_1 = arith.constant 0 : index
    %c0_2 = arith.constant 0 : index
    %1 = vector.load %arg2[%c0_1, %c0_2] : memref<64x128xbf16, #tpu.memory_space<vmem>>, vector<64x128xbf16>
    %cst = arith.constant dense<0.000000e+00> : vector<128x128xf32>
    %2 = tpu.matmul %0, %1, %cst {dimension_numbers = #tpu.dot_dimension_numbers<[1], [0], [0], [1], [0, 0, 1, 1], [], []>} : vector<128x64xbf16>, vector<64x128xbf16>, vector<128x128xf32> -> vector<128x128xf32>
    %c0_3 = arith.constant 0 : index
    %c0_4 = arith.constant 0 : index
    %3 = vector.load %arg3[%c0_3, %c0_4] : memref<128x8xf32, #tpu.memory_space<vmem>>, vector<128x8xf32>
    %cst_5 = arith.constant dense<0.000000e+00> : vector<128x8xf32>
    %4 = tpu.matmul %2, %3, %cst_5 {dimension_numbers = #tpu.dot_dimension_numbers<[1], [0], [0], [1], [0, 0, 1, 1], [], []>} : vector<128x128xf32>, vector<128x8xf32>, vector<128x8xf32> -> vector<128x8xf32>
    %c0_6 = arith.constant 0 : index
    %c0_7 = arith.constant 0 : index
    %5 = vector.load %arg5[%c0_6, %c0_7] : memref<128x8xf32, #tpu.memory_space<vmem>>, vector<128x8xf32>
    tpu.vector_store %arg5[%c0_6, %c0_7], %4 {strides = array<i32>} : memref<128x8xf32, #tpu.memory_space<vmem>>, vector<128x8xf32>,
    %6 = arith.truncf %2 : vector<128x128xf32> to vector<128x128xbf16>
    %c0_8 = arith.constant 0 : index
    %c0_9 = arith.constant 0 : index
    %7 = vector.load %arg4[%c0_8, %c0_9] : memref<128x128xbf16, #tpu.memory_space<vmem>>, vector<128x128xbf16>
    tpu.vector_store %arg4[%c0_8, %c0_9], %6 {strides = array<i32>} : memref<128x128xbf16, #tpu.memory_space<vmem>>, vector<128x128xbf16>,
    return
  }
  func.func @transform_0(%arg0: i32) -> (i32, i32) {
    %c0_i32 = arith.constant 0 : i32
    %c0_i32_0 = arith.constant 0 : i32
    return %arg0, %c0_i32 : i32, i32
  }
  func.func @transform_1(%arg0: i32) -> (i32, i32) {
    %c0_i32 = arith.constant 0 : i32
    %c0_i32_0 = arith.constant 0 : i32
    %c0_i32_1 = arith.constant 0 : i32
    return %c0_i32, %c0_i32_0 : i32, i32
  }
  func.func @transform_2(%arg0: i32) -> (i32, i32) {
    %c0_i32 = arith.constant 0 : i32
    %c0_i32_0 = arith.constant 0 : i32
    %c0_i32_1 = arith.constant 0 : i32
    return %c0_i32, %c0_i32_0 : i32, i32
  }
  func.func @transform_3(%arg0: i32) -> (i32, i32) {
    %c0_i32 = arith.constant 0 : i32
    %c0_i32_0 = arith.constant 0 : i32
    return %arg0, %c0_i32 : i32, i32
  }
  func.func @transform_4(%arg0: i32) -> (i32, i32) {
    %c0_i32 = arith.constant 0 : i32
    %c0_i32_0 = arith.constant 0 : i32
    return %arg0, %c0_i32 : i32, i32
  }
}

</mosaic_0001>

<bundles_post_ra>
// kernel: tpu_custom_call.1
= control target key start
LH: loop header
LB: loop body
LE: loop exit
PB: predicated region body
PF: predicated region fallthrough
CT: control target
= control target key end

     0   :  { %10 = vsyncpa [#allocation3], 0  ;;  %s1134_s0 = inlined_call_operand.vmem [shape: bf16[256,64], index: 0, kind: input, shape index: {}]   ;;  %s1135_s1 = inlined_call_operand.vmem [shape: bf16[64,128], index: 1, kind: input, shape index: {}]   ;;  %s1136_s2 = inlined_call_operand.vmem [shape: f32[128,8], index: 2, kind: input, shape index: {}]   ;;  %s1137_s3 = inlined_call_operand.hbm [shape: bf16[256,128], index: 3, kind: output, shape index: {0}]   ;;  %s1138_s4 = inlined_call_operand.vmem [shape: f32[256,8], index: 4, kind: output, shape index: {1}]  }
   0x1   :  { %12 = vsyncpa [#allocation3 + $0x1], 0  ;;  %s916_s15 = smov 0   ;;  %s918_s16 = smov 0  }
   0x2   :  { %s920_s17 = smov 0   ;;  %s922_s18 = smov 0  }
   0x3 LB: > { %s937_s19 = sadd.s32 4294967295, %s887_s18   ;;  %s618_s20 = sadd.s32 4294967294, %s887_s18   ;;  %s887_s18 = sphi %s922_s18, %s1144_s18   ;;  %s883_s17 = sphi %s920_s17, %s1143_s17   ;;  %s879_s16 = sphi %s918_s16, %s1142_s16   ;;  %s875_s15 = sphi %s916_s15, %s1141_s15  }
   0x4   : > { %s941_s21 = sadd.s32 1, %s887_s18   ;;  %s93_s22 = sadd.s32 1, %s883_s17 }
   0x5   : > { %s90_s23 = ssub.s32 %s887_s18, %s941_s21  ;;  %p103_p0 = scmp.ne.s32.totalorder %s883_s17, %s879_s16 }
   0x6   : > { %p91_p1 = scmp.eq.s32.totalorder %s90_s23, 0  ;;  %p104_p2 = scmp.eq.s32.totalorder %s937_s19, 1 }
   0x7   : > { %p109_p3 = scmp.ne.s32.totalorder %s879_s16, %s875_s15  ;;  %p110_p4 = scmp.eq.s32.totalorder %s618_s20, 1 }
   0x8   : > { %s952_s24 = scalar_select %p91_p1, %s883_s17, %s93_s22  }
   0x9   : > { %p954_p5 = por %p104_p2, %p103_p0  ;;  %p958_p6 = por %p110_p4, %p109_p3 }
   0xa   : > { %p621_p7 = scmp.ge.s32.totalorder %s887_s18, 1  ;;  %p169_p8 = scmp.lt.s32.totalorder %s887_s18, 3 }
   0xc   : > { %p170_p9 = pnand %p621_p7, %p169_p8 }
   0xd   : > { %s623_s29 = sshll.u32 (!%p170_p9), %s937_s19, 4  ;;  %s190_s22 = sand.u32 (!%p170_p9), 1, %s879_s16  }
   0xe   : > { %173 = sbr.rel (%p170_p9) target bundleno = 398 (0x18e), region = 32  ;;  %p201_p10 = scmp.lt.s32.totalorder (!%p170_p9), %s623_s29, 31 }
   0xf   : > { %s700_s27 = sshll.u32 (!%p170_p9), %s937_s19, 6  ;;  %s845_s19 = scalar_lea.hbm (!%p170_p9), %s1137_s3, 128 }
  0x10   : > { %s523_s5 = scalar_lea.hbm (!%p170_p9), %s1137_s3, %s700_s27 }
  0x11   : > { %s526_s7 = sshll.u32 (!%p170_p9), %s523_s5, 4  ;;  %s527_s7 = int_to_ptr.hbm [resolvable:$true] %s526_s7 }
  0x12   : > { %s839_s9 = sshra.s32 (!%p170_p9), %s527_s7, 4  ;;  %s840_s9 = int_to_ptr.hbm [resolvable:$true] %s839_s9 }
  0x13   : > { %v699_v0 = vld [vmem:[%s1135_s1 + $0x18] sm:$0xff]  ;;  %v698_v1 = vld [vmem:[%s1135_s1 + $0x10] sm:$0xff]  ;;  %s1146_s29 = smov (!%p201_p10, %s623_s29), 31  ;;  %v697_v2 = vld [vmem:[%s1135_s1 + $0x8] sm:$0xff]  ;;  %vm302_vm0 = vcmask 523264   ;;  %s841_s10 = scalar_lea.hbm %s840_s9, 64 }
  0x14   : > { %331 = vmatpush.bf16.msra.mxu0 %v699_v0  ;;  %748 = vmatpush.bf16.msra.mxu3 %v699_v0  ;;  %s624_s8 = sshll.u32 %s1146_s29, 2  ;;  %v696_v3 = vld [vmem:[%s1135_s1] sm:$0xff]  ;;  %v391_v9 = vld [vmem:[%s1136_s2 + $0x78] sm:$0xff]  ;;  %v390_v10 = vld [vmem:[%s1136_s2 + $0x70] sm:$0xff]  ;;  %p842_p11 = scmp.ne.s32.totalorder %s840_s9, %s841_s10 }
  0x15   : > { %s983_s13 = scalar_lea.vmem %s1134_s0, %s624_s8  ;;  %392 = vmatpush.msra.mxu1 %v391_v9  ;;  %752 = vmatpush.msra.mxu2 %v391_v9  ;;  %v389_v11 = vld [vmem:[%s1136_s2 + $0x68] sm:$0xff]  ;;  %v388_v12 = vld [vmem:[%s1136_s2 + $0x60] sm:$0xff]  ;;  %v387_v13 = vld [vmem:[%s1136_s2 + $0x58] sm:$0xff]  ;;  %s507_s8 = scalar_lea.sflag [#allocation3], %s190_s22 }
  0x16   : > { %v688_v4 = vld [vmem:[%s983_s13] sm:$0xff]  ;;  %v689_v5 = vld [vmem:[%s983_s13 + $0x8] sm:$0xff]  ;;  %v690_v7 = vld [vmem:[%s983_s13 + $0x10] sm:$0xff]  ;;  %p843_p12 = pnand %p842_p11, %p954_p5  ;;  %p846_p0 = scmp.lt.s32.totalorder %s840_s9, %s1137_s3 }
  0x17   : > { %v693_v6 = vld [vmem:[%s983_s13 + $0x28] sm:$0xff]  ;;  %v694_v8 = vld [vmem:[%s983_s13 + $0x30] sm:$0xff]  ;;  %393 = vmatpush.msra.mxu1 %v390_v10  ;;  %754 = vmatpush.msra.mxu2 %v390_v10  ;;  %v691_v16 = vld [vmem:[%s983_s13 + $0x18] sm:$0xff]  ;;  %p847_p1 = scmp.lt.s32.totalorder %s845_s19, %s841_s10 }
  0x18   : > { %332 = vmatpush.bf16.msra.mxu0 %v698_v1  ;;  %749 = vmatpush.bf16.msra.mxu3 %v698_v1  ;;  %v386_v14 = vld [vmem:[%s1136_s2 + $0x50] sm:$0xff]  ;;  %v385_v15 = vld [vmem:[%s1136_s2 + $0x48] sm:$0xff]  ;;  %v384_v17 = vld [vmem:[%s1136_s2 + $0x40] sm:$0xff]  ;;  %p844_p13 = pneg %p843_p12 }
  0x19   : > { %394 = vmatpush.msra.mxu1 %v389_v11  ;;  %756 = vmatpush.msra.mxu2 %v389_v11  ;;  %v695_v18 = vld [vmem:[%s983_s13 + $0x38] sm:$0xff]  ;;  %v382_v20 = vld [vmem:[%s1136_s2 + $0x30] sm:$0xff]  ;;  %v381_v21 = vld [vmem:[%s1136_s2 + $0x28] sm:$0xff]  ;;  %p848_p2 = por %p847_p1, %p846_p0 }
  0x1a   : > { %v383_v19 = vld [vmem:[%s1136_s2 + $0x38] sm:$0xff]  ;;  %v380_v22 = vld [vmem:[%s1136_s2 + $0x20] sm:$0xff]  ;;  %v378_v24 = vld [vmem:[%s1136_s2 + $0x10] sm:$0xff] }
  0x1b   : > { %395 = vmatpush.msra.mxu1 %v388_v12  ;;  %758 = vmatpush.msra.mxu2 %v388_v12  ;;  %v379_v23 = vld [vmem:[%s1136_s2 + $0x18] sm:$0xff]  ;;  %v377_v25 = vld [vmem:[%s1136_s2 + $0x8] sm:$0xff]  ;;  %v692_v26 = vld [vmem:[%s983_s13 + $0x20] sm:$0xff]  ;;  %s622_s13 = sshll.u32 %s190_s22, 6  ;;  %p849_p3 = pnand %p848_p2, %p844_p13 }
  0x1c   : > { %333 = vmatpush.bf16.msra.mxu0 %v697_v2  ;;  %750 = vmatpush.bf16.msra.mxu3 %v697_v2  ;;  %v376_v27 = vld [vmem:[%s1136_s2] sm:$0xff]  ;;  %s1052_s23 = scalar_lea.vmem [#allocation2], %s622_s13 }
  0x1d   : > { %396 = vmatpush.msra.mxu1 %v387_v13  ;;  %760 = vmatpush.msra.mxu2 %v387_v13  ;;  %s524_s6 = sshll.u32 %s1052_s23, 4  ;;  %s525_s6 = int_to_ptr.vmem [resolvable:$true] %s524_s6 }
  0x1f   : > { %397 = vmatpush.msra.mxu1 %v386_v14  ;;  %762 = vmatpush.msra.mxu2 %v386_v14 }
  0x20   : > { %334 = vmatpush.bf16.msra.mxu0 %v696_v3  ;;  %751 = vmatpush.bf16.msra.mxu3 %v696_v3 }
  0x21   : > { %398 = vmatpush.msra.mxu1 %v385_v15  ;;  %764 = vmatpush.msra.mxu2 %v385_v15 }
  0x23   : > { %675 = vmatmul.msk.bf16.vlgmr.msra.gmra.mxu0 %vm302_vm0, %v688_v4  ;;  %680 = vmatmul.msk.bf16.vlgmr.msra.gmra.mxu3 %vm302_vm0, %v693_v6 }
  0x24   : > { %753 = vmatpush.msrb.mxu3 %v391_v9  ;;  %399 = vmatpush.msra.mxu1 %v384_v17 }
  0x25   : > { %766 = vmatpush.msra.mxu2 %v384_v17 }
  0x26   : > { %755 = vmatpush.msrb.mxu3 %v390_v10  ;;  %400 = vmatpush.msra.mxu1 %v383_v19 }
  0x27   : > { %768 = vmatpush.msra.mxu2 %v383_v19 }
  0x28   : > { %757 = vmatpush.msrb.mxu3 %v389_v11  ;;  %401 = vmatpush.msra.mxu1 %v382_v20 }
  0x29   : > { %770 = vmatpush.msra.mxu2 %v382_v20 }
  0x2a   : > { %759 = vmatpush.msrb.mxu3 %v388_v12  ;;  %402 = vmatpush.msra.mxu1 %v381_v21 }
  0x2b   : > { %772 = vmatpush.msra.mxu2 %v381_v21 }
  0x2c   : > { %761 = vmatpush.msrb.mxu3 %v387_v13  ;;  %403 = vmatpush.msra.mxu1 %v380_v22 }
  0x2d   : > { %774 = vmatpush.msra.mxu2 %v380_v22 }
  0x2e   : > { %763 = vmatpush.msrb.mxu3 %v386_v14  ;;  %404 = vmatpush.msra.mxu1 %v379_v23 }
  0x2f   : > { %776 = vmatpush.msra.mxu2 %v379_v23 }
  0x30   : > { %765 = vmatpush.msrb.mxu3 %v385_v15  ;;  %405 = vmatpush.msra.mxu1 %v378_v24 }
  0x31   : > { %778 = vmatpush.msra.mxu2 %v378_v24 }
  0x32   : > { %767 = vmatpush.msrb.mxu3 %v384_v17  ;;  %406 = vmatpush.msra.mxu1 %v377_v25 }
  0x33   : > { %676 = vmatmul.msk.bf16.gmra.mxu0 %vm302_vm0, %v689_v5  ;;  %681 = vmatmul.msk.bf16.gmra.mxu3 %vm302_vm0, %v694_v8 }
  0x34   : > { %769 = vmatpush.msrb.mxu3 %v383_v19  ;;  %780 = vmatpush.msra.mxu2 %v377_v25 }
  0x35   : > { %407 = vmatpush.msra.mxu1 %v376_v27 }
  0x36   : > { %771 = vmatpush.msrb.mxu3 %v382_v20  ;;  %782 = vmatpush.msra.mxu2 %v376_v27 }
  0x38   : > { %773 = vmatpush.msrb.mxu3 %v381_v21 }
  0x3a   : > { %775 = vmatpush.msrb.mxu3 %v380_v22 }
  0x3c   : > { %777 = vmatpush.msrb.mxu3 %v379_v23 }
  0x3e   : > { %779 = vmatpush.msrb.mxu3 %v378_v24 }
  0x40   : > { %781 = vmatpush.msrb.mxu3 %v377_v25 }
  0x42   : > { %783 = vmatpush.msrb.mxu3 %v376_v27 }
  0x43   : > { %677 = vmatmul.msk.bf16.gmra.mxu0 %vm302_vm0, %v690_v7  ;;  %682 = vmatmul.msk.bf16.gmra.mxu3 %vm302_vm0, %v695_v18 }
  0x53   : > { %678 = vmatmul.msk.bf16.gmra.mxu0 %vm302_vm0, %v691_v16 }
  0x63   : > { %679 = vmatmul.msk.bf16.gmra.mxu0 %vm302_vm0, %v692_v26 }
  0xa0   : > { %v336_v28 = vpop.f32.mrf.mxu0 }
  0xa1   : > { %408 = vmatmul.f32.vlgmr.msra.gmra.mxu1 %v336_v28 }
  0xa6   : > { %v361_v33 = vpop.f32.mrf.mxu3 }
  0xa8   : > { %v338_v29 = vpop.f32.mrf.mxu0 }
  0xa9   : > { %v704_v30 = vpack.c.bf16 %v338_v29, %v336_v28  ;;  %411 = vmatmul.f32.gmra.mxu1 %v338_v29 }
  0xab   : > { %705 = vst [vmem:[%s1052_s23] sm:$0xff] %v704_v30  }
  0xae   : > { %v363_v36 = vpop.f32.mrf.mxu3 }
  0xaf   : > { %v729_v37 = vpack.c.bf16 %v363_v36, %v361_v33 }
  0xb0   : > { %v341_v31 = vpop.f32.mrf.mxu0 }
  0xb1   : > { %414 = vmatmul.f32.gmra.mxu1 %v341_v31  ;;  %745 = vst [vmem:[%s1052_s23 + $0x28] sm:$0xff] %v729_v37  }
  0xb6   : > { %v366_v39 = vpop.f32.mrf.mxu3 }
  0xb8   : > { %v343_v32 = vpop.f32.mrf.mxu0 }
  0xb9   : > { %v709_v34 = vpack.c.bf16 %v343_v32, %v341_v31  ;;  %417 = vmatmul.f32.gmra.mxu1 %v343_v32 }
  0xbb   : > { %741 = vst [vmem:[%s1052_s23 + $0x8] sm:$0xff] %v709_v34  }
  0xbe   : > { %v368_v42 = vpop.f32.mrf.mxu3 }
  0xbf   : > { %v734_v43 = vpack.c.bf16 %v368_v42, %v366_v39 }
  0xc0   : > { %v346_v35 = vpop.f32.mrf.mxu0 }
  0xc1   : > { %420 = vmatmul.f32.gmra.mxu1 %v346_v35  ;;  %746 = vst [vmem:[%s1052_s23 + $0x30] sm:$0xff] %v734_v43  }
  0xc6   : > { %v371_v45 = vpop.f32.mrf.mxu3 }
  0xc7   : > { %450 = vmatmul.f32.vlgmr.msrb.gmra.mxu3 %v371_v45 }
  0xc8   : > { %v348_v38 = vpop.f32.mrf.mxu0 }
  0xc9   : > { %v714_v40 = vpack.c.bf16 %v348_v38, %v346_v35  ;;  %423 = vmatmul.f32.gmra.mxu1 %v348_v38 }
  0xcb   : > { %742 = vst [vmem:[%s1052_s23 + $0x10] sm:$0xff] %v714_v40  }
  0xce   : > { %v373_v48 = vpop.f32.mrf.mxu3 }
  0xcf   : > { %v739_v49 = vpack.c.bf16 %v373_v48, %v371_v45  ;;  %453 = vmatmul.f32.gmra.mxu3 %v373_v48 }
  0xd0   : > { %v351_v41 = vpop.f32.mrf.mxu0 }
  0xd1   : > { %426 = vmatmul.f32.gmra.mxu1 %v351_v41  ;;  %747 = vst [vmem:[%s1052_s23 + $0x38] sm:$0xff] %v739_v49  }
  0xd8   : > { %v353_v44 = vpop.f32.mrf.mxu0 }
  0xd9   : > { %v719_v46 = vpack.c.bf16 %v353_v44, %v351_v41  ;;  %429 = vmatmul.f32.vlgmr.msra.gmra.mxu2 %v353_v44 }
  0xdb   : > { %743 = vst [vmem:[%s1052_s23 + $0x18] sm:$0xff] %v719_v46  }
  0xe0   : > { %v356_v47 = vpop.f32.mrf.mxu0 }
  0xe1   : > { %432 = vmatmul.f32.gmra.mxu2 %v356_v47 }
  0xe8   : > { %v358_v50 = vpop.f32.mrf.mxu0 }
  0xe9   : > { %v724_v51 = vpack.c.bf16 %v358_v50, %v356_v47  ;;  %435 = vmatmul.f32.gmra.mxu2 %v358_v50 }
  0xeb   : > { %744 = vst [vmem:[%s1052_s23 + $0x20] sm:$0xff] %v724_v51  }
  0xf1   : > { %438 = vmatmul.f32.gmra.mxu2 %v361_v33 }
  0xf9   : > { %441 = vmatmul.f32.gmra.mxu2 %v363_v36 }
 0x101   : > { %444 = vmatmul.f32.gmra.mxu2 %v366_v39 }
 0x109   : > { %447 = vmatmul.f32.gmra.mxu2 %v368_v42 }
 0x10a   : > { %852 = shalt.err (!%p849_p3)
}
 0x10b   : > { %s889_s22 = smov 64   ;;  %s890_s13 = smov 4   ;;  %vm457_vm1 = vcmask 64512  }
 0x10c   : > { %784 = dma.vmem_to_hbm [thread:$0]  (%p954_p5), %s525_s6, 1024, %s527_s7, %s507_s8, %s889_s22, %s889_s22, %s890_s13  }
 0x10d   : > { %s626_s23 = sshll.u32 %s1146_s29, 3 }
 0x10e   : > { %s1083_s30 = scalar_lea.vmem %s1138_s4, %s626_s23 }
 0x11e   : > { %v409_v52 = vpop.f32.mrf.mxu1 }
 0x11f   : > { %458 = vst.msk [vmem:[%s1083_s30] sm:$0xff] %vm457_vm1, %v409_v52 }
 0x126   : > { %v412_v53 = vpop.f32.mrf.mxu1 }
 0x127   : > { %459 = vst.msk [vmem:[%s1083_s30 + $0x8] sm:$0xff] %vm457_vm1, %v412_v53 }
 0x12e   : > { %v415_v54 = vpop.f32.mrf.mxu1 }
 0x12f   : > { %460 = vst.msk [vmem:[%s1083_s30 + $0x10] sm:$0xff] %vm457_vm1, %v415_v54 }
 0x136   : > { %v418_v55 = vpop.f32.mrf.mxu1 }
 0x137   : > { %461 = vst.msk [vmem:[%s1083_s30 + $0x18] sm:$0xff] %vm457_vm1, %v418_v55 }
 0x13e   : > { %v421_v56 = vpop.f32.mrf.mxu1 }
 0x13f   : > { %462 = vst.msk [vmem:[%s1083_s30 + $0x20] sm:$0xff] %vm457_vm1, %v421_v56 }
 0x146   : > { %v424_v57 = vpop.f32.mrf.mxu1 }
 0x147   : > { %463 = vst.msk [vmem:[%s1083_s30 + $0x28] sm:$0xff] %vm457_vm1, %v424_v57 }
 0x14a   : > { %v451_v60 = vpop.f32.mrf.mxu3 }
 0x14b   : > { %472 = vst.msk [vmem:[%s1083_s30 + $0x70] sm:$0xff] %vm457_vm1, %v451_v60 }
 0x14e   : > { %v427_v58 = vpop.f32.mrf.mxu1 }
 0x14f   : > { %464 = vst.msk [vmem:[%s1083_s30 + $0x30] sm:$0xff] %vm457_vm1, %v427_v58 }
 0x152   : > { %v454_v62 = vpop.f32.mrf.mxu3 }
 0x153   : > { %473 = vst.msk [vmem:[%s1083_s30 + $0x78] sm:$0xff] %vm457_vm1, %v454_v62 }
 0x15c   : > { %v430_v59 = vpop.f32.mrf.mxu2 }
 0x15d   : > { %465 = vst.msk [vmem:[%s1083_s30 + $0x38] sm:$0xff] %vm457_vm1, %v430_v59 }
 0x164   : > { %v433_v61 = vpop.f32.mrf.mxu2 }
 0x165   : > { %466 = vst.msk [vmem:[%s1083_s30 + $0x40] sm:$0xff] %vm457_vm1, %v433_v61 }
 0x16c   : > { %v436_v63 = vpop.f32.mrf.mxu2 }
 0x16d   : > { %467 = vst.msk [vmem:[%s1083_s30 + $0x48] sm:$0xff] %vm457_vm1, %v436_v63 }
 0x174   : > { %v439_v0 = vpop.f32.mrf.mxu2 }
 0x175   : > { %468 = vst.msk [vmem:[%s1083_s30 + $0x50] sm:$0xff] %vm457_vm1, %v439_v0 }
 0x17c   : > { %v442_v1 = vpop.f32.mrf.mxu2 }
 0x17d   : > { %469 = vst.msk [vmem:[%s1083_s30 + $0x58] sm:$0xff] %vm457_vm1, %v442_v1 }
 0x184   : > { %v445_v2 = vpop.f32.mrf.mxu2 }
 0x185   : > { %470 = vst.msk [vmem:[%s1083_s30 + $0x60] sm:$0xff] %vm457_vm1, %v445_v2 }
 0x18c   : > { %v448_v3 = vpop.f32.mrf.mxu2 }
 0x18d   : > { %471 = vst.msk [vmem:[%s1083_s30 + $0x68] sm:$0xff] %vm457_vm1, %v448_v3 }
 0x18e PF: > { %p790_p4 = scmp.ge.s32.totalorder %s887_s18, 2  ;;  %s545_s25 = sand.u32 1, %s875_s15  }
 0x18f   : > { %s546_s29 = scalar_lea.sflag [#allocation3], %s545_s25 }
 0x190   : > { %p787_p5 = pnand %p790_p4, %p958_p6 }
 0x192   : > { %p788_p7 = pneg %p787_p5 }
 0x194   : > { %870 = dma.done.wait (%p788_p7), %s546_s29, 1024  }
 0x195   : > { %872 = vsyncadd (%p788_p7), %s546_s29, 4294966272  ;;  %p15_p8 = scmp.ge.s32.totalorder %s941_s21, 4   ;;  %s1141_s15 = smov %s879_s16 }
 0x196   : > { %s1142_s16 = smov %s883_s17  ;;  %s1143_s17 = smov %s952_s24 }
 0x197   : > { %s1144_s18 = smov %s941_s21  ;;  %17 = sbr.rel (!%p15_p8) target bundleno = 3 (0x3), region = 79 }
 0x19c   :  { %560 = vsyncpa [#allocation3], 1 }
 0x19d   :  { %562 = vsyncpa [#allocation3 + $0x1], 1 }

</bundles_post_ra>
